<compile_context>
chip_gen: v6e
topology: v6e:2x2x1
jax: 0.10.0
libtpu: 0.0.40
codegen_flags: <defaults>
</compile_context>

<pallas_src>
import jax
import jax.numpy as jnp
from jax.experimental import pallas as pl
from jax.experimental.pallas import tpu as pltpu

# ---- config (mirrors __C) ---------------------------------------------------
HIDDEN_SIZE = 32      # __C.HIDDEN_SIZE
FLAT_MLP_SIZE = 64    # __C.FLAT_MLP_SIZE
FLAT_GLIMPSES = 1     # __C.FLAT_GLIMPSES (the .squeeze(-1) softmax path assumes 1)
FLAT_OUT_SIZE = 64    # __C.FLAT_OUT_SIZE
SEQ = 8
BATCH = 2


def attflat_kernel(valid_len_ref,   # SMEM (B,) int32, scalar-prefetched
                   x_ref,           # VMEM (B_T, S, H)
                   w1_ref,          # VMEM (H, M)
                   mlpvec_ref,      # VMEM (3, M): row0 = b1, row1 = w2 row, row2 = [b2,0,...]
                   wm_ref,          # VMEM (G*H, FLAT_OUT)
                   bm_ref,          # VMEM (1, FLAT_OUT)
                   out_ref):        # VMEM (B_T, FLAT_OUT)
    b_t, s, h = x_ref.shape
    x = x_ref[...]                                     # (B_T, S, H)
    x2d = x.reshape(b_t * s, h)                        # batch-fused GEMM operand

    b1 = mlpvec_ref[0:1, :]                            # (1, M)
    w2_row = mlpvec_ref[1:2, :]                        # (1, M)  (second Linear, transposed)
    b2 = mlpvec_ref[2:3, 0:1]                          # (1, 1)

    # MLP first layer: one (B_T*S, H) @ (H, M) GEMM on the MXU.
    hmid = jnp.dot(x2d, w1_ref[...], preferred_element_type=jnp.float32) + b1
    hmid = jnp.maximum(hmid, 0.0)                      # ReLU (dropout = identity)

    # Second layer has output width G == 1 -> VPU multiply + lane reduce (no N=1 matmul).
    logits = jnp.sum((hmid * w2_row).reshape(b_t, s, FLAT_MLP_SIZE), axis=-1)  # (B_T, S)
    logits = logits + b2

    # Pad mask rebuilt in-kernel from scalar-prefetched lengths (no HBM mask stream).
    neg = jnp.float32(-1e9)
    b0 = pl.program_id(0) * b_t
    seq_iota = jax.lax.broadcasted_iota(jnp.int32, (b_t, s), 1)
    row_iota = jax.lax.broadcasted_iota(jnp.int32, (b_t, s), 0)
    for i in range(b_t):                               # b_t is small & static
        li = valid_len_ref[b0 + i]
        pad_row = jnp.logical_and(row_iota == i, seq_iota >= li)
        logits = jnp.where(pad_row, neg, logits)

    # Softmax over the sequence axis (lanes).
    m = jnp.max(logits, axis=-1, keepdims=True)
    e = jnp.exp(logits - m)
    att = e / jnp.sum(e, axis=-1, keepdims=True)       # (B_T, S)

    # Glimpse-weighted sum over S (FLAT_GLIMPSES == 1): (B_T, H)
    xa = jnp.sum(att.reshape(b_t, s, 1) * x, axis=1)

    # Batched linear_merge + one dense (B_T, FLAT_OUT) store.
    out = jnp.dot(xa, wm_ref[...], preferred_element_type=jnp.float32) + bm_ref[...]
    out_ref[...] = out.astype(out_ref.dtype)


def att_flat(x, x_mask, params):
    """x: (B, S, H) f32; x_mask: (B, 1, 1, S) bool, True = padded (trailing pads)."""
    B, S, H = x.shape
    w1, b1, w2, b2, wm, bm = params
    assert FLAT_GLIMPSES == 1

    # Trailing-pad mask -> per-row valid length (standard MCAN make_mask semantics).
    valid_len = jnp.sum(jnp.logical_not(x_mask.reshape(B, S)), axis=-1).astype(jnp.int32)

    # Pack b1 / w2-row / b2 into one small lane-dense VMEM slab (single input stream).
    mlpvec = jnp.zeros((3, FLAT_MLP_SIZE), jnp.float32)
    mlpvec = mlpvec.at[0, :].set(b1.reshape(FLAT_MLP_SIZE))
    mlpvec = mlpvec.at[1, :].set(w2.reshape(FLAT_MLP_SIZE))   # (M, 1) -> row
    mlpvec = mlpvec.at[2, 0].set(b2[0, 0])

    # Batch tile: whole batch in one step when small; multiple-of-8 tiles for larger B
    # (keeps a parallel grid axis so both TCs work on v7x and the store is sublane-dense).
    b_tile = B if B <= 8 else 8
    assert B % b_tile == 0, "batch must be divisible by the batch tile"
    grid = (B // b_tile,)

    out = pl.pallas_call(
        attflat_kernel,
        out_shape=jax.ShapeDtypeStruct((B, FLAT_OUT_SIZE), jnp.float32),
        grid_spec=pltpu.PrefetchScalarGridSpec(
            num_scalar_prefetch=1,
            grid=grid,
            in_specs=[
                pl.BlockSpec((b_tile, S, H), lambda i, vl: (i, 0, 0)),                  # x
                pl.BlockSpec((H, FLAT_MLP_SIZE), lambda i, vl: (0, 0)),                 # W1
                pl.BlockSpec((3, FLAT_MLP_SIZE), lambda i, vl: (0, 0)),                 # b1/w2/b2
                pl.BlockSpec((H * FLAT_GLIMPSES, FLAT_OUT_SIZE), lambda i, vl: (0, 0)), # Wm
                pl.BlockSpec((1, FLAT_OUT_SIZE), lambda i, vl: (0, 0)),                 # bm
            ],
            out_specs=pl.BlockSpec((b_tile, FLAT_OUT_SIZE), lambda i, vl: (i, 0)),
        ),
        compiler_params=pltpu.CompilerParams(dimension_semantics=("parallel",)),
    )(valid_len, x, w1, mlpvec, wm, bm)
    return out


def reference(x, x_mask, params):
    """Pure-JAX replica of the PyTorch forward (softmax glimpse path) for verification."""
    w1, b1, w2, b2, wm, bm = params
    h = jnp.maximum(jnp.einsum('bsh,hm->bsm', x, w1) + b1, 0.0)
    att = jnp.einsum('bsm,mg->bsg', h, w2) + b2                       # (B,S,G)
    mask = x_mask.reshape(x.shape[0], x.shape[1], 1)
    att = jnp.where(mask, jnp.float32(-1e9), att)
    att = jax.nn.softmax(att.squeeze(-1), axis=-1)[..., None]         # (B,S,1)
    att_list = [jnp.sum(att[:, :, i:i + 1] * x, axis=1)
                for i in range(FLAT_GLIMPSES)]
    x_atted = jnp.concatenate(att_list, axis=1)
    return x_atted @ wm + bm


if __name__ == "__main__":
    key = jax.random.PRNGKey(0)
    k_x, k_w1, k_b1, k_w2, k_b2, k_wm, k_bm = jax.random.split(key, 7)

    x = jax.random.normal(k_x, (BATCH, SEQ, HIDDEN_SIZE), dtype=jnp.float32)

    # pad mask (B, 1, 1, S): True where padded — batch 0 pads last 2, batch 1 pads last 3
    seq_ids = jnp.arange(SEQ)[None, :]
    valid_len = jnp.array([[SEQ - 2], [SEQ - 3]])
    x_mask = (seq_ids >= valid_len).reshape(BATCH, 1, 1, SEQ)

    # deterministic parameter init (weights stored as (in, out), i.e. torch W^T)
    s = 0.02
    params = (
        s * jax.random.normal(k_w1, (HIDDEN_SIZE, FLAT_MLP_SIZE), jnp.float32),
        s * jax.random.normal(k_b1, (1, FLAT_MLP_SIZE), jnp.float32),
        s * jax.random.normal(k_w2, (FLAT_MLP_SIZE, FLAT_GLIMPSES), jnp.float32),
        s * jax.random.normal(k_b2, (1, FLAT_GLIMPSES), jnp.float32),
        s * jax.random.normal(k_wm, (HIDDEN_SIZE * FLAT_GLIMPSES, FLAT_OUT_SIZE), jnp.float32),
        s * jax.random.normal(k_bm, (1, FLAT_OUT_SIZE), jnp.float32),
    )

    out = att_flat(x, x_mask, params)
    out = jax.block_until_ready(out)

    ref = reference(x, x_mask, params)
    assert out.shape == (BATCH, FLAT_OUT_SIZE)
    assert jnp.allclose(out, ref, atol=1e-5, rtol=1e-5), "mismatch vs pure-JAX reference"

    print("KERNEL_OK")
</pallas_src>

<mosaic_0001>
module attributes {stable_mosaic.version = 11 : i64} {
  func.func @attflat_kernel(%arg0: i32, %arg1: memref<2xi32, #tpu.memory_space<smem>>, %arg2: memref<2x8x32xf32, #tpu.memory_space<vmem>>, %arg3: memref<32x64xf32, #tpu.memory_space<vmem>>, %arg4: memref<3x64xf32, #tpu.memory_space<vmem>>, %arg5: memref<32x64xf32, #tpu.memory_space<vmem>>, %arg6: memref<1x64xf32, #tpu.memory_space<vmem>>, %arg7: memref<2x64xf32, #tpu.memory_space<vmem>>) attributes {dimension_semantics = [#tpu.dimension_semantics<parallel>], iteration_bounds = array<i64: 1>, scalar_prefetch = 1 : i64, scratch_operands = 0 : i64, tpu.core_type = #tpu.core_type<tc>, window_params = [{transform_indices = @transform_0, window_bounds = array<i64: 2, 8, 32>}, {pipeline_mode = #tpu.pipeline_mode<synchronous>, transform_indices = @transform_1, window_bounds = array<i64: 32, 64>}, {pipeline_mode = #tpu.pipeline_mode<synchronous>, transform_indices = @transform_2, window_bounds = array<i64: 3, 64>}, {pipeline_mode = #tpu.pipeline_mode<synchronous>, transform_indices = @transform_3, window_bounds = array<i64: 32, 64>}, {pipeline_mode = #tpu.pipeline_mode<synchronous>, transform_indices = @transform_4, window_bounds = array<i64: 1, 64>}, {transform_indices = @transform_5, window_bounds = array<i64: 2, 64>}]} {
    %c0 = arith.constant 0 : index
    %c0_0 = arith.constant 0 : index
    %c0_1 = arith.constant 0 : index
    %0 = vector.load %arg2[%c0, %c0_0, %c0_1] : memref<2x8x32xf32, #tpu.memory_space<vmem>>, vector<2x8x32xf32>
    %1 = vector.shape_cast %0 : vector<2x8x32xf32> to vector<16x32xf32>
    %c0_2 = arith.constant 0 : index
    %c0_3 = arith.constant 0 : index
    %2 = vector.load %arg4[%c0_2, %c0_3] : memref<3x64xf32, #tpu.memory_space<vmem>>, vector<1x64xf32>
    %c1 = arith.constant 1 : index
    %c0_4 = arith.constant 0 : index
    %3 = vector.load %arg4[%c1, %c0_4] : memref<3x64xf32, #tpu.memory_space<vmem>>, vector<1x64xf32>
    %c2 = arith.constant 2 : index
    %c0_5 = arith.constant 0 : index
    %4 = vector.load %arg4[%c2, %c0_5] : memref<3x64xf32, #tpu.memory_space<vmem>>, vector<1x1xf32>
    %c0_6 = arith.constant 0 : index
    %c0_7 = arith.constant 0 : index
    %5 = vector.load %arg3[%c0_6, %c0_7] : memref<32x64xf32, #tpu.memory_space<vmem>>, vector<32x64xf32>
    %cst = arith.constant dense<0.000000e+00> : vector<16x64xf32>
    %6 = tpu.matmul %1, %5, %cst {dimension_numbers = #tpu.dot_dimension_numbers<[1], [0], [0], [1], [0, 0, 1, 1], [], []>} : vector<16x32xf32>, vector<32x64xf32>, vector<16x64xf32> -> vector<16x64xf32>
    %7 = vector.broadcast %2 : vector<1x64xf32> to vector<16x64xf32>
    %8 = arith.addf %6, %7 : vector<16x64xf32>
    %cst_8 = arith.constant 0.000000e+00 : f32
    %9 = vector.broadcast %cst_8 : f32 to vector<16x64xf32>
    %10 = arith.maximumf %8, %9 : vector<16x64xf32>
    %11 = vector.broadcast %3 : vector<1x64xf32> to vector<16x64xf32>
    %12 = arith.mulf %10, %11 : vector<16x64xf32>
    %13 = vector.shape_cast %12 : vector<16x64xf32> to vector<2x8x64xf32>
    %cst_9 = arith.constant dense<0.000000e+00> : vector<2x8xf32>
    %14 = vector.multi_reduction <add>, %13, %cst_9 [2] : vector<2x8x64xf32> to vector<2x8xf32>
    %15 = vector.broadcast %4 : vector<1x1xf32> to vector<2x8xf32>
    %16 = arith.addf %14, %15 : vector<2x8xf32>
    %c2_i32 = arith.constant 2 : i32
    %17 = arith.muli %arg0, %c2_i32 : i32
    %18 = tpu.iota {dimensions = array<i32: 1>} : vector<2x8xi32>
    %19 = tpu.iota {dimensions = array<i32: 0>} : vector<2x8xi32>
    %c0_i32 = arith.constant 0 : i32
    %20 = arith.addi %17, %c0_i32 : i32
    %21 = arith.index_cast %20 : i32 to index
    %22 = memref.load %arg1[%21] : memref<2xi32, #tpu.memory_space<smem>>
    %c0_i32_10 = arith.constant 0 : i32
    %23 = vector.broadcast %c0_i32_10 : i32 to vector<2x8xi32>
    %24 = arith.cmpi eq, %19, %23 : vector<2x8xi32>
    %25 = vector.broadcast %22 : i32 to vector<2x8xi32>
    %26 = arith.cmpi sge, %18, %25 : vector<2x8xi32>
    %27 = arith.andi %24, %26 : vector<2x8xi1>
    %cst_11 = arith.constant -1.000000e+09 : f32
    %28 = vector.broadcast %cst_11 : f32 to vector<2x8xf32>
    %29 = arith.select %27, %28, %16 : vector<2x8xi1>, vector<2x8xf32>
    %c1_i32 = arith.constant 1 : i32
    %30 = arith.addi %17, %c1_i32 : i32
    %31 = arith.index_cast %30 : i32 to index
    %32 = memref.load %arg1[%31] : memref<2xi32, #tpu.memory_space<smem>>
    %c1_i32_12 = arith.constant 1 : i32
    %33 = vector.broadcast %c1_i32_12 : i32 to vector<2x8xi32>
    %34 = arith.cmpi eq, %19, %33 : vector<2x8xi32>
    %35 = vector.broadcast %32 : i32 to vector<2x8xi32>
    %36 = arith.cmpi sge, %18, %35 : vector<2x8xi32>
    %37 = arith.andi %34, %36 : vector<2x8xi1>
    %cst_13 = arith.constant -1.000000e+09 : f32
    %38 = vector.broadcast %cst_13 : f32 to vector<2x8xf32>
    %39 = arith.select %37, %38, %29 : vector<2x8xi1>, vector<2x8xf32>
    %cst_14 = arith.constant dense<0xFF800000> : vector<2xf32>
    %40 = vector.multi_reduction <maximumf>, %39, %cst_14 [1] : vector<2x8xf32> to vector<2xf32>
    %41 = vector.shape_cast %40 : vector<2xf32> to vector<2x1xf32>
    %42 = vector.broadcast %41 : vector<2x1xf32> to vector<2x8xf32>
    %43 = arith.subf %39, %42 : vector<2x8xf32>
    %44 = math.exp %43 : vector<2x8xf32>
    %cst_15 = arith.constant dense<0.000000e+00> : vector<2xf32>
    %45 = vector.multi_reduction <add>, %44, %cst_15 [1] : vector<2x8xf32> to vector<2xf32>
    %46 = vector.shape_cast %45 : vector<2xf32> to vector<2x1xf32>
    %47 = vector.broadcast %46 : vector<2x1xf32> to vector<2x8xf32>
    %48 = arith.divf %44, %47 : vector<2x8xf32>
    %49 = vector.shape_cast %48 : vector<2x8xf32> to vector<2x8x1xf32>
    %50 = vector.broadcast %49 : vector<2x8x1xf32> to vector<2x8x32xf32>
    %51 = arith.mulf %50, %0 : vector<2x8x32xf32>
    %cst_16 = arith.constant dense<0.000000e+00> : vector<2x32xf32>
    %52 = vector.multi_reduction <add>, %51, %cst_16 [1] : vector<2x8x32xf32> to vector<2x32xf32>
    %c0_17 = arith.constant 0 : index
    %c0_18 = arith.constant 0 : index
    %53 = vector.load %arg5[%c0_17, %c0_18] : memref<32x64xf32, #tpu.memory_space<vmem>>, vector<32x64xf32>
    %cst_19 = arith.constant dense<0.000000e+00> : vector<2x64xf32>
    %54 = tpu.matmul %52, %53, %cst_19 {dimension_numbers = #tpu.dot_dimension_numbers<[1], [0], [0], [1], [0, 0, 1, 1], [], []>} : vector<2x32xf32>, vector<32x64xf32>, vector<2x64xf32> -> vector<2x64xf32>
    %c0_20 = arith.constant 0 : index
    %c0_21 = arith.constant 0 : index
    %55 = vector.load %arg6[%c0_20, %c0_21] : memref<1x64xf32, #tpu.memory_space<vmem>>, vector<1x64xf32>
    %56 = vector.broadcast %55 : vector<1x64xf32> to vector<2x64xf32>
    %57 = arith.addf %54, %56 : vector<2x64xf32>
    %c0_22 = arith.constant 0 : index
    %c0_23 = arith.constant 0 : index
    %58 = vector.load %arg7[%c0_22, %c0_23] : memref<2x64xf32, #tpu.memory_space<vmem>>, vector<2x64xf32>
    tpu.vector_store %arg7[%c0_22, %c0_23], %57 {strides = array<i32>} : memref<2x64xf32, #tpu.memory_space<vmem>>, vector<2x64xf32>,
    return
  }
  func.func @transform_0(%arg0: i32, %arg1: memref<2xi32, #tpu.memory_space<smem>>) -> (i32, i32, i32) {
    %c0_i32 = arith.constant 0 : i32
    %c0_i32_0 = arith.constant 0 : i32
    %c0_i32_1 = arith.constant 0 : i32
    return %arg0, %c0_i32, %c0_i32_0 : i32, i32, i32
  }
  func.func @transform_1(%arg0: i32, %arg1: memref<2xi32, #tpu.memory_space<smem>>) -> (i32, i32) {
    %c0_i32 = arith.constant 0 : i32
    %c0_i32_0 = arith.constant 0 : i32
    %c0_i32_1 = arith.constant 0 : i32
    return %c0_i32, %c0_i32_0 : i32, i32
  }
  func.func @transform_2(%arg0: i32, %arg1: memref<2xi32, #tpu.memory_space<smem>>) -> (i32, i32) {
    %c0_i32 = arith.constant 0 : i32
    %c0_i32_0 = arith.constant 0 : i32
    %c0_i32_1 = arith.constant 0 : i32
    return %c0_i32, %c0_i32_0 : i32, i32
  }
  func.func @transform_3(%arg0: i32, %arg1: memref<2xi32, #tpu.memory_space<smem>>) -> (i32, i32) {
    %c0_i32 = arith.constant 0 : i32
    %c0_i32_0 = arith.constant 0 : i32
    %c0_i32_1 = arith.constant 0 : i32
    return %c0_i32, %c0_i32_0 : i32, i32
  }
  func.func @transform_4(%arg0: i32, %arg1: memref<2xi32, #tpu.memory_space<smem>>) -> (i32, i32) {
    %c0_i32 = arith.constant 0 : i32
    %c0_i32_0 = arith.constant 0 : i32
    %c0_i32_1 = arith.constant 0 : i32
    return %c0_i32, %c0_i32_0 : i32, i32
  }
  func.func @transform_5(%arg0: i32, %arg1: memref<2xi32, #tpu.memory_space<smem>>) -> (i32, i32) {
    %c0_i32 = arith.constant 0 : i32
    %c0_i32_0 = arith.constant 0 : i32
    return %arg0, %c0_i32 : i32, i32
  }
}

</mosaic_0001>

<bundles_post_ra>
// kernel: tpu_custom_call.1
= control target key start
LH: loop header
LB: loop body
LE: loop exit
PB: predicated region body
PF: predicated region fallthrough
CT: control target
= control target key end

     0   :  { %s511_s21 = smov [#allocation3]   ;;  %s597_s0 = inlined_call_operand.hbm [shape: s32[2], index: 0, kind: input, shape index: {}]   ;;  %s598_s1 = inlined_call_operand.hbm [shape: f32[2,8,32], index: 1, kind: input, shape index: {}]   ;;  %s599_s2 = inlined_call_operand.hbm [shape: f32[32,64], index: 2, kind: input, shape index: {}]   ;;  %s600_s3 = inlined_call_operand.vmem [shape: f32[3,64], index: 3, kind: input, shape index: {}]   ;;  %s601_s4 = inlined_call_operand.hbm [shape: f32[32,64], index: 4, kind: input, shape index: {}]   ;;  %s602_s5 = inlined_call_operand.vmem [shape: f32[1,64], index: 5, kind: input, shape index: {}]   ;;  %s603_s6 = inlined_call_operand.hbm [shape: f32[2,64], index: 6, kind: output, shape index: {}]  }
   0x1   :  { %12 = dma.hbm_to_smem %s597_s0, 16, %s511_s21, [#allocation2] }
   0x2   :  { %503 = dma.done.wait [#allocation2], 16 }
   0x3   :  { %504 = vsyncadd [#allocation2], 4294967280 }
   0x4   :  { %14 = sfence }
   0x5   :  { %15 = vsyncpa [#allocation5], 0 }
   0x6   :  { %16 = vsyncpa [#allocation8], 0 }
   0x7   :  { %17 = vsyncpa [#allocation6], 0  ;;  %s512_s24 = smov [#allocation7]   ;;  %s513_s26 = smov [#allocation4]  }
   0x8   :  { %s35_s25 = sshll.u32 %s512_s24, 4  ;;  %s23_s27 = sshll.u32 %s513_s26, 4  ;;  %s36_s25 = int_to_ptr.vmem [resolvable:$true] %s35_s25  ;;  %s24_s27 = int_to_ptr.vmem [resolvable:$true] %s23_s27 }
   0x9   :  { %s431_s28 = scalar_lea.vmem %s36_s25, 512  ;;  %p436_p1 = scmp.lt.s32.totalorder %s36_s25, %s36_s25 }
   0xa   :  { %p432_p0 = scmp.ne.s32.totalorder %s36_s25, %s431_s28  ;;  %p437_p2 = scmp.lt.s32.totalorder %s431_s28, %s431_s28 }
   0xc   :  { %p438_p3 = por %p437_p2, %p436_p1 }
   0xe   :  { %p439_p4 = pnand %p438_p3, %p432_p0 }
  0x10   :  { %442 = shalt.err (!%p439_p4)
}
  0x11   :  { %s514_s0 = smov 128   ;;  %s515_s29 = smov 8  }
  0x12   :  { %41 = dma.hbm_to_vmem [thread:$0]  %s599_s2, 512, %s36_s25, [#allocation8], %s514_s0, %s514_s0, %s515_s29  }
  0x13   :  { %s451_s8 = scalar_lea.vmem %s24_s27, 256  ;;  %p456_p6 = scmp.lt.s32.totalorder %s24_s27, %s24_s27 }
  0x14   :  { %p452_p5 = scmp.ne.s32.totalorder %s24_s27, %s451_s8  ;;  %p457_p7 = scmp.lt.s32.totalorder %s451_s8, %s451_s8 }
  0x16   :  { %p458_p8 = por %p457_p7, %p456_p6 }
  0x18   :  { %p459_p9 = pnand %p458_p8, %p452_p5 }
  0x1a   :  { %462 = shalt.err (!%p459_p9)
}
  0x1b   :  { %29 = dma.hbm_to_vmem [thread:$0]  %s598_s1, 256, %s24_s27, [#allocation5], %s514_s0, %s514_s0, %s515_s29  }
  0x1c   :  { %s516_s11 = smov [#allocation9]  }
  0x1d   :  { %s49_s12 = sshll.u32 %s516_s11, 4  ;;  %s50_s12 = int_to_ptr.vmem [resolvable:$true] %s49_s12 }
  0x1e   :  { %s471_s13 = scalar_lea.vmem %s50_s12, 512  ;;  %p476_p11 = scmp.lt.s32.totalorder %s50_s12, %s50_s12 }
  0x1f   :  { %p472_p10 = scmp.ne.s32.totalorder %s50_s12, %s471_s13  ;;  %p477_p12 = scmp.lt.s32.totalorder %s471_s13, %s471_s13 }
  0x21   :  { %p478_p13 = por %p477_p12, %p476_p11 }
  0x23   :  { %p479_p0 = pnand %p478_p13, %p472_p10 }
  0x25   :  { %482 = shalt.err (!%p479_p0)
}
  0x26   :  { %55 = dma.hbm_to_vmem [thread:$0]  %s601_s4, 512, %s50_s12, [#allocation8], %s514_s0, %s514_s0, %s515_s29  }
  0x27   :  { %505 = dma.done.wait [#allocation5], 256  }
  0x28   :  { %506 = vsyncadd [#allocation5], 4294967040 }
  0x29   :  { %507 = dma.done.wait [#allocation8], 1024  }
  0x2a   :  { %508 = vsyncadd [#allocation8], 4294966272  ;;  %vm80_vm0 = vcmask 261120   ;;  %v75_v0 = vld [vmem:[#allocation7 + $0x18] sm:$0xff]  ;;  %v74_v1 = vld [vmem:[#allocation7 + $0x10] sm:$0xff]  ;;  %vm170_vm1 = vcmask 523264   ;;  %v184_v19 = vlaneseq }
  0x2b   :  { %378 = vmatprep.subr.mxu0 %v75_v0  ;;  %v567_v2 = vld [vmem:[#allocation4] sm:$0xff]  ;;  %v73_v3 = vld [vmem:[#allocation7 + $0x8] sm:$0xff]  ;;  %v72_v4 = vld [vmem:[#allocation7] sm:$0xff]  ;;  %s188_s19 = sld [smem:[#allocation3]]  ;;  %vm203_vm6 = vcmask 1041409   ;;  %vm214_vm9 = vcmask 58368  }
  0x2c   :  { %379 = vmatpush3.msra.mxu0 %v75_v0  ;;  %386 = vmatprep.mubr.msk.f32.mxu0 %vm80_vm0, %v567_v2  ;;  %v571_v5 = vld [vmem:[#allocation4 + $0x8] sm:$0xff]  ;;  %v71_v6 = vld [vmem:[%s600_s3 + $0x2] sm:$0x1]  ;;  %v360_v7 = vld [vmem:[%s600_s3] ss:$0 sm:$0xff]  ;;  %s364_s20 = sld [smem:[#allocation3 + $0x1]] }
  0x2d   :  { %380 = vmatprep.subr.mxu0 %v74_v1  ;;  %400 = vpush %v71_v6  ;;  %v363_v14 = vld [vmem:[%s600_s3 + $0x1] ss:$0 sm:$0xff]  ;;  %v185_v20 = vand.u32 127, %v184_v19  ;;  %v187_v21 = vshrl.u32 %v184_v19, 7  ;;  %v517_v45 = vmov 0.0   ;;  %v259_v46 = vld [vmem:[#allocation9 + $0x18] sm:$0xff] }
  0x2e   :  { %381 = vmatpush3.msra.mxu0 %v74_v1  ;;  %389 = vmatprep.subr.mxu1 %v517_v45  ;;  %v258_v48 = vld [vmem:[#allocation9 + $0x10] sm:$0xff]  ;;  %v257_v51 = vld [vmem:[#allocation9 + $0x8] sm:$0xff]  ;;  %v256_v52 = vld [vmem:[#allocation9] sm:$0xff]  ;;  %vm518_vm10 = vmmov 0   ;;  %s519_s23 = smov [#allocation10]   ;;  %vm342_vm11 = vcmask 517120  }
  0x2f   :  { %382 = vmatprep.subr.mxu0 %v73_v3  ;;  %v197_v26 = vsub.s32 %v185_v20, %v187_v21  ;;  %vm189_vm2 = vcmp.eq.s32.totalorder %v187_v21, 0  ;;  %vm209_vm4 = vcmp.eq.s32.totalorder %v187_v21, 1  ;;  %v235_v42 = vsub.s32 1, %v187_v21  ;;  %390 = vmatpush3.msra.mxu1 %v259_v46  ;;  %s350_s24 = sshll.u32 %s519_s23, 4  ;;  %s351_s24 = int_to_ptr.vmem [resolvable:$true] %s350_s24 }
  0x30   :  { %383 = vmatpush3.msra.mxu0 %v73_v3  ;;  %v228_v43 = vsub.s32 0, %v187_v21  ;;  %391 = vmatprep.subr.mxu1 %v517_v45  ;;  %s483_s25 = scalar_lea.vmem %s351_s24, 32  ;;  %p488_p2 = scmp.lt.s32.totalorder %s351_s24, %s351_s24 }
  0x31   :  { %384 = vmatprep.subr.mxu0 %v72_v4  ;;  %v190_v24 = vstv %s188_s19  ;;  %392 = vmatpush3.msra.mxu1 %v258_v48  ;;  %p484_p1 = scmp.ne.s32.totalorder %s351_s24, %s483_s25  ;;  %p489_p3 = scmp.lt.s32.totalorder %s483_s25, %s483_s25 }
  0x32   :  { %385 = vmatpush3.msra.mxu0 %v72_v4  ;;  %v210_v25 = vstv %s364_s20  ;;  %vm191_vm3 = vcmp.ge.s32.totalorder %v185_v20, %v190_v24  ;;  %393 = vmatprep.subr.mxu1 %v517_v45 }
  0x33   :  { %387 = vmatmul.mubr.msk.f32.vlgmr.msra.gmra.mxu0 %vm80_vm0, %v571_v5  ;;  %vm211_vm5 = vcmp.ge.s32.totalorder %v185_v20, %v210_v25  ;;  %vm192_vm7 = vmand %vm189_vm2, %vm191_vm3  ;;  %394 = vmatpush3.msra.mxu1 %v257_v51  ;;  %p490_p4 = por %p489_p3, %p488_p2 }
  0x34   :  { %vm212_vm8 = vmand %vm209_vm4, %vm211_vm5  ;;  %397 = vmatprep.mubr.msk.f32.mxu1 %vm518_vm10, %v517_v45  ;;  %395 = vmatprep.subr.mxu1 %v517_v45 }
  0x35   :  { %396 = vmatpush3.msra.mxu1 %v256_v52  ;;  %p491_p5 = pnand %p490_p4, %p484_p1 }
  0x5e   :  { %s401_s21 = spop %400 }
  0x5f   :  { %v179_v22 = vstv %s401_s21 }
  0xf3   :  { %v388_v8 = vpop.f32.mrf.mxu0 }
  0xf4   :  { %v159_v9 = vadd.f32 %v388_v8, %v360_v7 }
  0xf5   :  { %v153_v10 = vpop.f32.mrf.mxu0 }
  0xf6   :  { %v154_v11 = vadd.f32 %v360_v7, %v153_v10  ;;  %v163_v12 = vmax.f32 %v159_v9, 0.0 }
  0xf8   :  { %v162_v13 = vmax.f32 %v154_v11, 0.0  ;;  %v169_v17 = vmul.f32 %v363_v14, %v163_v12 }
  0xfa   :  { %v168_v15 = vmul.f32 %v363_v14, %v162_v13  ;;  %v174_v18 = vsel %vm170_vm1, %v169_v17, 0.0 }
  0xfc   :  { %v171_v16 = vsel %vm170_vm1, %v168_v15, 0.0 }
  0xfd   :  { %172 = vadd.xlane.f32.xlu0 %v171_v16 }
 0x101   :  { %175 = vadd.xlane.f32.xlu0 %v174_v18 }
 0x186   :  { %v173_v23 = vpop.xlane.xlu0 %172 }
 0x187   :  { %v181_v27 = vadd.f32 %v179_v22, %v173_v23 }
 0x189   :  { %v198_v30 = vrot.slane %v181_v27, %v197_v26 }
 0x18a   :  { %v176_v28 = vpop.xlane.xlu0 %175 }
 0x18b   :  { %v182_v29 = vadd.f32 %v179_v22, %v176_v28 }
 0x18d   :  { %v202_v31 = vrot.slane %v182_v29, %v197_v26 }
 0x18f   :  { %v204_v32 = vsel %vm203_vm6, %v202_v31, %v198_v30 }
 0x190   :  { %v206_v33 = vsel %vm192_vm7, -1e+09, %v204_v32 }
 0x191   :  { %v213_v34 = vsel %vm212_vm8, -1e+09, %v206_v33 }
 0x192   :  { %v215_v35 = vsel %vm214_vm9, %v213_v34, -inf }
 0x193   :  { %216 = vmax.xlane.f32.xlu1 %v215_v35 }
 0x21c   :  { %v217_v36 = vpop.xlane.xlu1 %216 }
 0x21d   :  { %v218_v37 = vsub.f32 %v213_v34, %v217_v36 }
 0x21f   :  { %v219_v38 = vmul.f32 1.442695, %v218_v37 }
 0x221   :  { %411 = vpow2.f32 %v219_v38 }
 0x22e   :  { %v412_v39 = vpop.eup %411 }
 0x22f   :  { %v221_v40 = vsel %vm214_vm9, %v412_v39, 0.0 }
 0x230   :  { %222 = vadd.xlane.f32.xlu1 %v221_v40 }
 0x2b9   :  { %v223_v41 = vpop.xlane.xlu1 %222 }
 0x2ba   :  { %413 = vrcp.f32 %v223_v41 }
 0x2c7   :  { %v414_v44 = vpop.eup %413 }
 0x2c8   :  { %v225_v47 = vmul.f32 %v414_v44, %v412_v39 }
 0x2ca   :  { %v236_v49 = vrot.slane %v225_v47, %v235_v42  ;;  %v229_v50 = vrot.slane %v225_v47, %v228_v43 }
 0x2cc   :  { %238 = vbcast.lane.b32.xlu1 %v236_v49, 256  ;;  %231 = vbcast.lane.b32.xlu0 %v229_v50, 256 }
 0x33e   :  { %v239_v53 = vpop.permute.xlu1 %238  ;;  %v232_v54 = vpop.permute.xlu0 %231 }
 0x33f   :  { %v241_v55 = vmul.f32 %v239_v53, %v571_v5  ;;  %v240_v56 = vmul.f32 %v232_v54, %v567_v2  ;;  %v365_v2 = vld [vmem:[%s602_s5] ss:$0 sm:$0xff] }
 0x341   :  { %v249_v57 = vsel %vm80_vm0, %v241_v55, 0.0  ;;  %v242_v58 = vsel %vm80_vm0, %v240_v56, 0.0 }
 0x342   :  { %v250_v59 = vrot.slane %v249_v57, 4  ;;  %v243_v60 = vrot.slane %v242_v58, 4 }
 0x344   :  { %v251_v61 = vadd.f32 %v250_v59, %v249_v57  ;;  %v244_v62 = vadd.f32 %v243_v60, %v242_v58 }
 0x346   :  { %v252_v63 = vrot.slane %v251_v61, 2  ;;  %v245_v0 = vrot.slane %v244_v62, 2 }
 0x348   :  { %v253_v1 = vadd.f32 %v252_v63, %v251_v61  ;;  %v246_v3 = vadd.f32 %v245_v0, %v244_v62 }
 0x34a   :  { %v254_v4 = vrot.slane %v253_v1, 1  ;;  %v247_v6 = vrot.slane %v246_v3, 1 }
 0x34c   :  { %v255_v7 = vadd.f32 %v254_v4, %v253_v1  ;;  %v248_v8 = vadd.f32 %v247_v6, %v246_v3 }
 0x34e   :  { %v269_v5 = vsel %vm203_vm6, %v255_v7, %v248_v8 }
 0x34f   :  { %398 = vmatmul.mubr.msk.f32.vlgmr.msra.gmra.mxu1 %vm80_vm0, %v269_v5 }
 0x40f   :  { %v338_v9 = vpop.f32.mrf.mxu1 }
 0x410   :  { %v339_v10 = vadd.f32 %v365_v2, %v338_v9 }
 0x411   :  { %v399_v11 = vpop.f32.mrf.mxu1 }
 0x412   :  { %343 = vst.msk [vmem:[#allocation10] sm:$0x3] %vm342_vm11, %v339_v10 }
 0x413   :  { %494 = shalt.err (!%p491_p5)
}
 0x414   :  { %353 = dma.vmem_to_hbm [thread:$0]  %s351_s24, 32, %s603_s6, [#allocation6]  }
 0x415   :  { %509 = dma.done.wait [#allocation6], 32  }
 0x416   :  { %510 = vsyncadd [#allocation6], 4294967264 }
 0x417   :  { %357 = vsyncpa [#allocation5], 1 }
 0x418   :  { %358 = vsyncpa [#allocation8], 1 }
 0x419   :  { %359 = vsyncpa [#allocation6], 1 }

</bundles_post_ra>
